<compile_context>
chip_gen: v7x
topology: tpu7x:2x2x1
jax: 0.10.0
libtpu: 0.0.40
codegen_flags: <defaults>
</compile_context>

<pallas_src>
import functools

import jax
import jax.numpy as jnp
from jax import lax
from jax.experimental import pallas as pl
from jax.experimental.pallas import tpu as pltpu


_LANE = 128          # lane width: keep feature dims multiples of this
_BN_EPS = 1e-5       # PyTorch BatchNorm1d default


def _round_up(x, m):
    return (x + m - 1) // m * m


# ---------------------------------------------------------------------------
# Fused kernel: whole forward pass in one body, activations stay in VMEM.
# Refs: (x, [Wt_0, gb_0, ..., Wt_{L-2}, gb_{L-2}], Wt_last, b_last, out)
#   Wt_l : bf16 [Din_pad, Dh_pad]      (no hidden-layer bias: cancelled by BN)
#   gb_l : f32  [2, Dh_pad]            (row 0 = gamma, row 1 = beta)
# ---------------------------------------------------------------------------
def make_fused_mlp_kernel(num_layers):
    def kernel(*refs):
        x_ref = refs[0]
        o_ref = refs[-1]
        p = refs[1:-1]

        h = x_ref[...]                                        # bf16 [N, Din_pad]
        inv_n = 1.0 / h.shape[0]                              # static

        for l in range(num_layers - 1):
            wt = p[2 * l][...]                                # bf16 [Din_pad, Dh_pad]
            gb = p[2 * l + 1][...]                            # f32  [2, Dh_pad]

            # bf16 MXU operands, f32 accumulate. Bias omitted: BN cancels it.
            y = jnp.dot(h, wt, preferred_element_type=jnp.float32)

            # One-sweep BatchNorm1d training stats (biased variance).
            mean = jnp.sum(y, axis=0, keepdims=True) * inv_n
            ey2 = jnp.sum(y * y, axis=0, keepdims=True) * inv_n
            var = ey2 - mean * mean

            # Folded BN affine: two per-element ops instead of four.
            scale = gb[0:1, :] * lax.rsqrt(var + _BN_EPS)     # [1, Dh_pad]
            shift = gb[1:2, :] - mean * scale                 # [1, Dh_pad]

            # ReLU, then carry the activation in bf16 (halves VMEM residency).
            h = jnp.maximum(y * scale + shift, 0.0).astype(jnp.bfloat16)

        wt = p[-2][...]                                       # bf16 [Dh_pad, Dout_pad]
        b = p[-1][...]                                        # f32  [1, Dout_pad]
        o_ref[...] = jnp.dot(h, wt, preferred_element_type=jnp.float32) + b

    return kernel


# ---------------------------------------------------------------------------
# Parameter construction (PyTorch-layout) + one-time preparation for the kernel
# ---------------------------------------------------------------------------
def init_mlp_params(key, num_layers, input_dim, hidden_dim, output_dim):
    """Mimics nn.Linear defaults: uniform(-1/sqrt(fan_in)). Weights stored [d_out, d_in]."""
    if num_layers < 1:
        raise ValueError("number of layers should be positive!")
    dims = [input_dim] + [hidden_dim] * (num_layers - 1) + [output_dim]
    params = {"linears": [], "batch_norms": []}
    for layer in range(num_layers):
        d_in, d_out = dims[layer], dims[layer + 1]
        key, kw, kb = jax.random.split(key, 3)
        bound = 1.0 / (d_in ** 0.5)
        w = jax.random.uniform(kw, (d_out, d_in), jnp.float32, -bound, bound)
        b = jax.random.uniform(kb, (d_out,), jnp.float32, -bound, bound)
        params["linears"].append((w, b))
    for _ in range(num_layers - 1):
        params["batch_norms"].append(
            (jnp.ones((hidden_dim,), jnp.float32),     # gamma
             jnp.zeros((hidden_dim,), jnp.float32))    # beta
        )
    return params


def prepare_params(params, num_layers, input_dim, hidden_dim, output_dim):
    """One-time (outside jit): transpose to [Din, Dout], zero-pad feature dims to
    multiples of 128 (lane-dense), cast matmul weights to bf16.
      * Hidden-layer biases are dropped (training-mode BN cancels them exactly).
      * gamma/beta packed into one (2, Dh_pad) array per hidden layer.
    Zero padding keeps the math exact on the original columns (padded BN columns
    stay exactly 0 through Linear + BN + ReLU)."""
    dims = [input_dim] + [hidden_dim] * (num_layers - 1) + [output_dim]
    pdims = [_round_up(d, _LANE) for d in dims]

    flat = []
    for l in range(num_layers):
        w, b = params["linears"][l]
        din, dout = dims[l], dims[l + 1]
        pdin, pdout = pdims[l], pdims[l + 1]

        wt = jnp.zeros((pdin, pdout), jnp.float32).at[:din, :dout].set(w.T)
        flat.append(wt.astype(jnp.bfloat16))   # pre-cast: halves weight DMA bytes

        if l < num_layers - 1:
            gamma, beta = params["batch_norms"][l]
            gb = jnp.zeros((2, pdout), jnp.float32)
            gb = gb.at[0, :dout].set(gamma).at[1, :dout].set(beta)
            flat.append(gb)
        else:
            bp = jnp.zeros((1, pdout), jnp.float32).at[:, :dout].set(b)
            flat.append(bp)
    return tuple(flat)


# ---------------------------------------------------------------------------
# Fused forward
# ---------------------------------------------------------------------------
@functools.partial(jax.jit, static_argnames=("num_layers", "output_dim"))
def mlp_forward(flat_params, x, num_layers, output_dim):
    n, din = x.shape
    pdin = flat_params[0].shape[0]          # padded input width
    pdout_last = flat_params[-1].shape[1]   # padded output width

    # bf16 input (kernel feeds bf16 to the MXU anyway) -> half the input DMA bytes.
    x_pad = jnp.pad(x.astype(jnp.bfloat16), ((0, 0), (0, pdin - din)))

    # Cost estimate + VMEM sizing.
    wt_list = [flat_params[2 * l] for l in range(num_layers - 1)] + [flat_params[-2]]
    flops = sum(2 * n * wt.shape[0] * wt.shape[1] for wt in wt_list)
    transcendentals = sum(wt.shape[1] for wt in wt_list[:-1])   # one rsqrt per BN feature
    param_bytes = sum(int(p.size) * p.dtype.itemsize for p in flat_params)
    out_bytes = n * pdout_last * 4
    bytes_accessed = x_pad.size * 2 + param_bytes + out_bytes
    cost = pl.CostEstimate(flops=flops, transcendentals=transcendentals,
                           bytes_accessed=bytes_accessed)

    max_width = max(int(p.shape[-1]) for p in flat_params)
    act_bytes = n * max_width * 4                        # f32 pre-BN activation y
    vmem_need = 2 * (x_pad.size * 2 + param_bytes + out_bytes) + 4 * act_bytes + (4 << 20)
    vmem_limit = int(min(max(vmem_need, 1 << 20), 64 << 20))

    vmem_spec = pl.BlockSpec(memory_space=pltpu.MemorySpace.VMEM)
    kernel = make_fused_mlp_kernel(num_layers)

    out_pad = pl.pallas_call(
        kernel,
        out_shape=jax.ShapeDtypeStruct((n, pdout_last), jnp.float32),
        in_specs=[vmem_spec] * (1 + len(flat_params)),
        out_specs=vmem_spec,
        cost_estimate=cost,
        compiler_params=pltpu.CompilerParams(vmem_limit_bytes=vmem_limit),
    )(x_pad, *flat_params)

    return out_pad[:, :output_dim]


# ---------------------------------------------------------------------------
# Pure-JAX references (original semantics: biases kept, two-pass variance)
# ---------------------------------------------------------------------------
def mlp_forward_ref(params, x, num_layers, bf16_matmul=True):
    def mm(a, w):  # w is [d_out, d_in]
        if bf16_matmul:
            return jnp.dot(a.astype(jnp.bfloat16), w.T.astype(jnp.bfloat16),
                           preferred_element_type=jnp.float32)
        return jnp.dot(a, w.T, preferred_element_type=jnp.float32)

    if num_layers == 1:
        w, b = params["linears"][0]
        return mm(x, w) + b
    h = x.astype(jnp.float32)
    for layer in range(num_layers - 1):
        w, b = params["linears"][layer]
        gamma, beta = params["batch_norms"][layer]
        y = mm(h, w) + b
        mean = jnp.mean(y, axis=0, keepdims=True)
        var = jnp.mean((y - mean) ** 2, axis=0, keepdims=True)
        y = (y - mean) * lax.rsqrt(var + _BN_EPS) * gamma + beta
        h = jnp.maximum(y, 0.0)
    w, b = params["linears"][num_layers - 1]
    return mm(h, w) + b


if __name__ == "__main__":
    num_layers = 3
    input_dim = 16
    hidden_dim = 32
    output_dim = 8
    batch = 16         # multiple of 16: bf16 vregs pack [16,128]; BN uses the true batch

    key = jax.random.PRNGKey(0)
    key_p, key_x = jax.random.split(key)
    params = init_mlp_params(key_p, num_layers, input_dim, hidden_dim, output_dim)
    x = jax.random.normal(key_x, (batch, input_dim), jnp.float32)

    flat = prepare_params(params, num_layers, input_dim, hidden_dim, output_dim)

    out = mlp_forward(flat, x, num_layers=num_layers, output_dim=output_dim)
    out = jax.block_until_ready(out)
    assert out.shape == (batch, output_dim), out.shape

    # Reference mirroring the kernel's bf16-operand / f32-accumulate matmuls
    # (kernel drops the BN-cancelled hidden bias and uses one-pass variance ->
    #  only tiny fp rounding differences).
    ref_bf16 = mlp_forward_ref(params, x, num_layers, bf16_matmul=True)
    assert jnp.allclose(out, ref_bf16, atol=2e-3, rtol=2e-3), "mismatch vs bf16 reference"

    # Loose sanity check vs full-f32 math (bf16 MXU operands loosen precision).
    ref_f32 = mlp_forward_ref(params, x, num_layers, bf16_matmul=False)
    assert jnp.allclose(out, ref_f32, atol=2.5e-1, rtol=2.5e-1), "mismatch vs f32 reference"

    print("KERNEL_OK")
</pallas_src>

<mosaic_0001>
module attributes {stable_mosaic.version = 11 : i64} {
  func.func @kernel(%arg0: memref<16x128xbf16, #tpu.memory_space<vmem>>, %arg1: memref<128x128xbf16, #tpu.memory_space<vmem>>, %arg2: memref<2x128xf32, #tpu.memory_space<vmem>>, %arg3: memref<128x128xbf16, #tpu.memory_space<vmem>>, %arg4: memref<2x128xf32, #tpu.memory_space<vmem>>, %arg5: memref<128x128xbf16, #tpu.memory_space<vmem>>, %arg6: memref<1x128xf32, #tpu.memory_space<vmem>>, %arg7: memref<16x128xf32, #tpu.memory_space<vmem>>) attributes {dimension_semantics = [], scalar_prefetch = 0 : i64, scratch_operands = 0 : i64, tpu.core_type = #tpu.core_type<tc>} {
    %c0 = arith.constant 0 : index
    %c0_0 = arith.constant 0 : index
    %0 = vector.load %arg0[%c0, %c0_0] : memref<16x128xbf16, #tpu.memory_space<vmem>>, vector<16x128xbf16>
    %c0_1 = arith.constant 0 : index
    %c0_2 = arith.constant 0 : index
    %1 = vector.load %arg1[%c0_1, %c0_2] : memref<128x128xbf16, #tpu.memory_space<vmem>>, vector<128x128xbf16>
    %c0_3 = arith.constant 0 : index
    %c0_4 = arith.constant 0 : index
    %2 = vector.load %arg2[%c0_3, %c0_4] : memref<2x128xf32, #tpu.memory_space<vmem>>, vector<2x128xf32>
    %cst = arith.constant dense<0.000000e+00> : vector<16x128xf32>
    %3 = tpu.matmul %0, %1, %cst {dimension_numbers = #tpu.dot_dimension_numbers<[1], [0], [0], [1], [0, 0, 1, 1], [], []>} : vector<16x128xbf16>, vector<128x128xbf16>, vector<16x128xf32> -> vector<16x128xf32>
    %cst_5 = arith.constant dense<0.000000e+00> : vector<128xf32>
    %4 = vector.multi_reduction <add>, %3, %cst_5 [0] : vector<16x128xf32> to vector<128xf32>
    %5 = vector.shape_cast %4 : vector<128xf32> to vector<1x128xf32>
    %cst_6 = arith.constant 6.250000e-02 : f32
    %6 = vector.broadcast %cst_6 : f32 to vector<1x128xf32>
    %7 = arith.mulf %5, %6 : vector<1x128xf32>
    %8 = arith.mulf %3, %3 : vector<16x128xf32>
    %cst_7 = arith.constant dense<0.000000e+00> : vector<128xf32>
    %9 = vector.multi_reduction <add>, %8, %cst_7 [0] : vector<16x128xf32> to vector<128xf32>
    %10 = vector.shape_cast %9 : vector<128xf32> to vector<1x128xf32>
    %cst_8 = arith.constant 6.250000e-02 : f32
    %11 = vector.broadcast %cst_8 : f32 to vector<1x128xf32>
    %12 = arith.mulf %10, %11 : vector<1x128xf32>
    %13 = arith.mulf %7, %7 : vector<1x128xf32>
    %14 = arith.subf %12, %13 : vector<1x128xf32>
    %15 = vector.extract_strided_slice %2 {offsets = [0, 0], sizes = [1, 128], strides = [1, 1]} : vector<2x128xf32> to vector<1x128xf32>
    %cst_9 = arith.constant 9.99999974E-6 : f32
    %16 = vector.broadcast %cst_9 : f32 to vector<1x128xf32>
    %17 = arith.addf %14, %16 : vector<1x128xf32>
    %18 = math.rsqrt %17 : vector<1x128xf32>
    %19 = arith.mulf %15, %18 : vector<1x128xf32>
    %20 = vector.extract_strided_slice %2 {offsets = [1, 0], sizes = [1, 128], strides = [1, 1]} : vector<2x128xf32> to vector<1x128xf32>
    %21 = arith.mulf %7, %19 : vector<1x128xf32>
    %22 = arith.subf %20, %21 : vector<1x128xf32>
    %23 = vector.broadcast %19 : vector<1x128xf32> to vector<16x128xf32>
    %24 = arith.mulf %3, %23 : vector<16x128xf32>
    %25 = vector.broadcast %22 : vector<1x128xf32> to vector<16x128xf32>
    %26 = arith.addf %24, %25 : vector<16x128xf32>
    %cst_10 = arith.constant 0.000000e+00 : f32
    %27 = vector.broadcast %cst_10 : f32 to vector<16x128xf32>
    %28 = arith.maximumf %26, %27 : vector<16x128xf32>
    %29 = arith.truncf %28 : vector<16x128xf32> to vector<16x128xbf16>
    %c0_11 = arith.constant 0 : index
    %c0_12 = arith.constant 0 : index
    %30 = vector.load %arg3[%c0_11, %c0_12] : memref<128x128xbf16, #tpu.memory_space<vmem>>, vector<128x128xbf16>
    %c0_13 = arith.constant 0 : index
    %c0_14 = arith.constant 0 : index
    %31 = vector.load %arg4[%c0_13, %c0_14] : memref<2x128xf32, #tpu.memory_space<vmem>>, vector<2x128xf32>
    %cst_15 = arith.constant dense<0.000000e+00> : vector<16x128xf32>
    %32 = tpu.matmul %29, %30, %cst_15 {dimension_numbers = #tpu.dot_dimension_numbers<[1], [0], [0], [1], [0, 0, 1, 1], [], []>} : vector<16x128xbf16>, vector<128x128xbf16>, vector<16x128xf32> -> vector<16x128xf32>
    %cst_16 = arith.constant dense<0.000000e+00> : vector<128xf32>
    %33 = vector.multi_reduction <add>, %32, %cst_16 [0] : vector<16x128xf32> to vector<128xf32>
    %34 = vector.shape_cast %33 : vector<128xf32> to vector<1x128xf32>
    %cst_17 = arith.constant 6.250000e-02 : f32
    %35 = vector.broadcast %cst_17 : f32 to vector<1x128xf32>
    %36 = arith.mulf %34, %35 : vector<1x128xf32>
    %37 = arith.mulf %32, %32 : vector<16x128xf32>
    %cst_18 = arith.constant dense<0.000000e+00> : vector<128xf32>
    %38 = vector.multi_reduction <add>, %37, %cst_18 [0] : vector<16x128xf32> to vector<128xf32>
    %39 = vector.shape_cast %38 : vector<128xf32> to vector<1x128xf32>
    %cst_19 = arith.constant 6.250000e-02 : f32
    %40 = vector.broadcast %cst_19 : f32 to vector<1x128xf32>
    %41 = arith.mulf %39, %40 : vector<1x128xf32>
    %42 = arith.mulf %36, %36 : vector<1x128xf32>
    %43 = arith.subf %41, %42 : vector<1x128xf32>
    %44 = vector.extract_strided_slice %31 {offsets = [0, 0], sizes = [1, 128], strides = [1, 1]} : vector<2x128xf32> to vector<1x128xf32>
    %cst_20 = arith.constant 9.99999974E-6 : f32
    %45 = vector.broadcast %cst_20 : f32 to vector<1x128xf32>
    %46 = arith.addf %43, %45 : vector<1x128xf32>
    %47 = math.rsqrt %46 : vector<1x128xf32>
    %48 = arith.mulf %44, %47 : vector<1x128xf32>
    %49 = vector.extract_strided_slice %31 {offsets = [1, 0], sizes = [1, 128], strides = [1, 1]} : vector<2x128xf32> to vector<1x128xf32>
    %50 = arith.mulf %36, %48 : vector<1x128xf32>
    %51 = arith.subf %49, %50 : vector<1x128xf32>
    %52 = vector.broadcast %48 : vector<1x128xf32> to vector<16x128xf32>
    %53 = arith.mulf %32, %52 : vector<16x128xf32>
    %54 = vector.broadcast %51 : vector<1x128xf32> to vector<16x128xf32>
    %55 = arith.addf %53, %54 : vector<16x128xf32>
    %cst_21 = arith.constant 0.000000e+00 : f32
    %56 = vector.broadcast %cst_21 : f32 to vector<16x128xf32>
    %57 = arith.maximumf %55, %56 : vector<16x128xf32>
    %58 = arith.truncf %57 : vector<16x128xf32> to vector<16x128xbf16>
    %c0_22 = arith.constant 0 : index
    %c0_23 = arith.constant 0 : index
    %59 = vector.load %arg5[%c0_22, %c0_23] : memref<128x128xbf16, #tpu.memory_space<vmem>>, vector<128x128xbf16>
    %c0_24 = arith.constant 0 : index
    %c0_25 = arith.constant 0 : index
    %60 = vector.load %arg6[%c0_24, %c0_25] : memref<1x128xf32, #tpu.memory_space<vmem>>, vector<1x128xf32>
    %cst_26 = arith.constant dense<0.000000e+00> : vector<16x128xf32>
    %61 = tpu.matmul %58, %59, %cst_26 {dimension_numbers = #tpu.dot_dimension_numbers<[1], [0], [0], [1], [0, 0, 1, 1], [], []>} : vector<16x128xbf16>, vector<128x128xbf16>, vector<16x128xf32> -> vector<16x128xf32>
    %62 = vector.broadcast %60 : vector<1x128xf32> to vector<16x128xf32>
    %63 = arith.addf %61, %62 : vector<16x128xf32>
    %c0_27 = arith.constant 0 : index
    %c0_28 = arith.constant 0 : index
    %64 = vector.load %arg7[%c0_27, %c0_28] : memref<16x128xf32, #tpu.memory_space<vmem>>, vector<16x128xf32>
    tpu.vector_store %arg7[%c0_27, %c0_28], %63 {strides = array<i32>} : memref<16x128xf32, #tpu.memory_space<vmem>>, vector<16x128xf32>,
    return
  }
}

</mosaic_0001>

<bundles_post_ra>
// kernel: mlp_forward.1
= control target key start
LH: loop header
LB: loop body
LE: loop exit
PB: predicated region body
PF: predicated region fallthrough
CT: control target
= control target key end

     0   :  { %12 = vsyncpa [#allocation3], 0  ;;  %s872_s0 = inlined_call_operand.vmem [shape: bf16[16,128], index: 0, kind: input, shape index: {}]   ;;  %s873_s1 = inlined_call_operand.hbm [shape: bf16[128,128], index: 1, kind: input, shape index: {}]   ;;  %s874_s2 = inlined_call_operand.vmem [shape: f32[2,128], index: 2, kind: input, shape index: {}]   ;;  %s875_s3 = inlined_call_operand.hbm [shape: bf16[128,128], index: 3, kind: input, shape index: {}]   ;;  %s876_s4 = inlined_call_operand.vmem [shape: f32[2,128], index: 4, kind: input, shape index: {}]   ;;  %s877_s5 = inlined_call_operand.hbm [shape: bf16[128,128], index: 5, kind: input, shape index: {}]   ;;  %s878_s6 = inlined_call_operand.vmem [shape: f32[1,128], index: 6, kind: input, shape index: {}]   ;;  %s879_s7 = inlined_call_operand.vmem [shape: f32[16,128], index: 7, kind: output, shape index: {}]  }
   0x1   :  { %13 = vsyncpa [#allocation5], 0  ;;  %s713_s24 = smov [#allocation4]   ;;  %s714_s26 = smov [#allocation2]  }
   0x2   :  { %s35_s25 = sshll.u32 %s713_s24, 4  ;;  %s21_s27 = sshll.u32 %s714_s26, 4  ;;  %s36_s25 = int_to_ptr.vmem [resolvable:$true] %s35_s25  ;;  %s760_s27 = int_to_ptr.vmem [resolvable:$true] %s21_s27 }
   0x3   :  { %s643_s30 = scalar_lea.hbm %s875_s3, 1024 }
   0x4   :  { %p644_p0 = scmp.ne.s32.totalorder %s875_s3, %s643_s30  ;;  %p647_p1 = scmp.lt.u32.totalorder %s643_s30, %s875_s3 }
   0x6   :  { %p649_p2 = pnand %p647_p1, %p644_p0 }
   0x8   :  { %652 = shalt.err (!%p649_p2)
}
   0x9   :  { %s653_s12 = scalar_lea.vmem %s36_s25, 1024  ;;  %p658_p4 = scmp.lt.s32.totalorder %s36_s25, %s36_s25 }
   0xa   :  { %p654_p3 = scmp.ne.s32.totalorder %s36_s25, %s653_s12  ;;  %p659_p5 = scmp.lt.s32.totalorder %s653_s12, %s653_s12 }
   0xc   :  { %p660_p6 = por %p659_p5, %p658_p4 }
   0xe   :  { %p661_p7 = pnand %p660_p6, %p654_p3 }
  0x10   :  { %664 = shalt.err (!%p661_p7)
}
  0x11   :  { %s715_s13 = smov 64   ;;  %s716_s14 = smov 4  }
  0x12   :  { %41 = dma.hbm_to_vmem [thread:$0]  %s875_s3, 1024, %s36_s25, [#allocation5], %s715_s13, %s715_s13, %s716_s14  }
  0x13   :  { %s665_s19 = scalar_lea.hbm %s873_s1, 1024 }
  0x14   :  { %p666_p8 = scmp.ne.s32.totalorder %s873_s1, %s665_s19  ;;  %p669_p9 = scmp.lt.u32.totalorder %s665_s19, %s873_s1 }
  0x16   :  { %p671_p10 = pnand %p669_p9, %p666_p8 }
  0x18   :  { %674 = shalt.err (!%p671_p10)
}
  0x19   :  { %s675_s24 = scalar_lea.vmem %s760_s27, 1024  ;;  %p680_p12 = scmp.lt.s32.totalorder %s760_s27, %s760_s27 }
  0x1a   :  { %p676_p11 = scmp.ne.s32.totalorder %s760_s27, %s675_s24  ;;  %p681_p13 = scmp.lt.s32.totalorder %s675_s24, %s675_s24 }
  0x1c   :  { %p682_p0 = por %p681_p13, %p680_p12 }
  0x1e   :  { %p683_p1 = pnand %p682_p0, %p676_p11 }
  0x20   :  { %686 = shalt.err (!%p683_p1)
}
  0x21   :  { %27 = dma.hbm_to_vmem [thread:$0]  %s873_s1, 1024, %s760_s27, [#allocation3], %s715_s13, %s715_s13, %s716_s14  }
  0x22   :  { %s717_s26 = smov [#allocation6]   ;;  %s687_s8 = scalar_lea.hbm %s877_s5, 1024 }
  0x23   :  { %s49_s28 = sshll.u32 %s717_s26, 4  ;;  %p688_p2 = scmp.ne.s32.totalorder %s877_s5, %s687_s8  ;;  %s50_s28 = int_to_ptr.vmem [resolvable:$true] %s49_s28 }
  0x24   :  { %p691_p3 = scmp.lt.u32.totalorder %s687_s8, %s877_s5 }
  0x26   :  { %p693_p4 = pnand %p691_p3, %p688_p2 }
  0x28   :  { %696 = shalt.err (!%p693_p4)
}
  0x29   :  { %s697_s15 = scalar_lea.vmem %s50_s28, 1024  ;;  %p702_p6 = scmp.lt.s32.totalorder %s50_s28, %s50_s28 }
  0x2a   :  { %p698_p5 = scmp.ne.s32.totalorder %s50_s28, %s697_s15  ;;  %p703_p7 = scmp.lt.s32.totalorder %s697_s15, %s697_s15 }
  0x2c   :  { %p704_p8 = por %p703_p7, %p702_p6 }
  0x2e   :  { %p705_p9 = pnand %p704_p8, %p698_p5 }
  0x30   :  { %708 = shalt.err (!%p705_p9)
}
  0x31   :  { %55 = dma.hbm_to_vmem [thread:$0]  %s877_s5, 1024, %s50_s28, [#allocation5], %s715_s13, %s715_s13, %s716_s14  }
  0x32   :  { %709 = dma.done.wait [#allocation3], 1024  }
  0x33   :  { %710 = vsyncadd [#allocation3], 4294966272 }
  0x34   :  { %711 = dma.done.wait [#allocation5], 2048  }
  0x35   :  { %712 = vsyncadd [#allocation5], 4294965248  ;;  %v718_v0 = vmov 0.0   ;;  %vm719_vm0 = vmmov 0   ;;  %v614_v1 = vld [vmem:[#allocation2] sm:$0xff]   ;;  %v615_v2 = vld [vmem:[#allocation2 + $0x8] sm:$0xff]   ;;  %v210_v43 = vlaneseq }
  0x36   :  { %547 = vmatprep.subr.bf16.mxu0 %v718_v0  ;;  %563 = vmatprep.mubr.msk.bf16.mxu0 %vm719_vm0, %v718_v0  ;;  %v616_v3 = vld [vmem:[#allocation2 + $0x10] sm:$0xff]   ;;  %v617_v4 = vld [vmem:[#allocation2 + $0x18] sm:$0xff]   ;;  %v618_v5 = vld [vmem:[#allocation2 + $0x20] sm:$0xff]  }
  0x37   :  { %567 = vmatprep.subr.bf16.mxu1 %v718_v0  ;;  %583 = vmatprep.mubr.msk.bf16.mxu1 %vm719_vm0, %v718_v0  ;;  %v619_v6 = vld [vmem:[#allocation2 + $0x28] sm:$0xff]   ;;  %v620_v7 = vld [vmem:[#allocation2 + $0x30] sm:$0xff]   ;;  %v621_v8 = vld [vmem:[#allocation2 + $0x38] sm:$0xff]   ;;  %v838_v44 = vshrl.u32 %v210_v43, 7 }
  0x38   :  { %548 = vmatpush3.bf16.msra.mxu0 %v614_v1  ;;  %v622_v9 = vld [vmem:[%s872_s0] sm:$0xff]   ;;  %v624_v11 = vld [vmem:[#allocation4 + $0x8] sm:$0xff]   ;;  %v625_v12 = vld [vmem:[#allocation4 + $0x10] sm:$0xff]  }
  0x39   :  { %549 = vmatprep.subr.bf16.mxu0 %v718_v0  ;;  %v623_v10 = vld [vmem:[#allocation4] sm:$0xff]   ;;  %v626_v13 = vld [vmem:[#allocation4 + $0x18] sm:$0xff]   ;;  %v628_v15 = vld [vmem:[#allocation4 + $0x28] sm:$0xff]   ;;  %v212_v46 = vsub.s32 0, %v838_v44  ;;  %v218_v54 = vsub.s32 1, %v838_v44 }
  0x3a   :  { %568 = vmatpush3.bf16.msra.mxu1 %v623_v10  ;;  %v627_v14 = vld [vmem:[#allocation4 + $0x20] sm:$0xff]   ;;  %v629_v16 = vld [vmem:[#allocation4 + $0x30] sm:$0xff]   ;;  %v630_v17 = vld [vmem:[#allocation4 + $0x38] sm:$0xff]  }
  0x3b   :  { %569 = vmatprep.subr.bf16.mxu1 %v718_v0  ;;  %v86_v45 = vld [vmem:[%s874_s2] sm:$0x3]  ;;  %v632_v63 = vld [vmem:[#allocation6 + $0x8] sm:$0xff]   ;;  %v633_v1 = vld [vmem:[#allocation6 + $0x10] sm:$0xff]  }
  0x3c   :  { %550 = vmatpush3.bf16.msra.mxu0 %v615_v2  ;;  %v631_v62 = vld [vmem:[#allocation6] sm:$0xff]   ;;  %v634_v2 = vld [vmem:[#allocation6 + $0x18] sm:$0xff]  }
  0x3d   :  { %551 = vmatprep.subr.bf16.mxu0 %v718_v0 }
  0x3e   :  { %570 = vmatpush3.bf16.msra.mxu1 %v624_v11 }
  0x3f   :  { %571 = vmatprep.subr.bf16.mxu1 %v718_v0 }
  0x40   :  { %552 = vmatpush3.bf16.msra.mxu0 %v616_v3  ;;  %v635_v3 = vld [vmem:[#allocation6 + $0x20] sm:$0xff]  }
  0x41   :  { %553 = vmatprep.subr.bf16.mxu0 %v718_v0 }
  0x42   :  { %572 = vmatpush3.bf16.msra.mxu1 %v625_v12 }
  0x43   :  { %573 = vmatprep.subr.bf16.mxu1 %v718_v0 }
  0x44   :  { %554 = vmatpush3.bf16.msra.mxu0 %v617_v4  ;;  %v636_v4 = vld [vmem:[#allocation6 + $0x28] sm:$0xff]  }
  0x45   :  { %555 = vmatprep.subr.bf16.mxu0 %v718_v0 }
  0x46   :  { %574 = vmatpush3.bf16.msra.mxu1 %v626_v13 }
  0x47   :  { %575 = vmatprep.subr.bf16.mxu1 %v718_v0 }
  0x48   :  { %556 = vmatpush3.bf16.msra.mxu0 %v618_v5  ;;  %v637_v5 = vld [vmem:[#allocation6 + $0x30] sm:$0xff]  }
  0x49   :  { %557 = vmatprep.subr.bf16.mxu0 %v718_v0 }
  0x4a   :  { %576 = vmatpush3.bf16.msra.mxu1 %v627_v14 }
  0x4b   :  { %577 = vmatprep.subr.bf16.mxu1 %v718_v0 }
  0x4c   :  { %558 = vmatpush3.bf16.msra.mxu0 %v619_v6  ;;  %v638_v6 = vld [vmem:[#allocation6 + $0x38] sm:$0xff]  }
  0x4d   :  { %559 = vmatprep.subr.bf16.mxu0 %v718_v0 }
  0x4e   :  { %578 = vmatpush3.bf16.msra.mxu1 %v628_v15 }
  0x4f   :  { %579 = vmatprep.subr.bf16.mxu1 %v718_v0 }
  0x50   :  { %560 = vmatpush3.bf16.msra.mxu0 %v620_v7 }
  0x51   :  { %561 = vmatprep.subr.bf16.mxu0 %v718_v0 }
  0x52   :  { %580 = vmatpush3.bf16.msra.mxu1 %v629_v16 }
  0x53   :  { %581 = vmatprep.subr.bf16.mxu1 %v718_v0 }
  0x54   :  { %562 = vmatpush3.bf16.msra.mxu0 %v621_v8 }
  0x55   :  { %587 = vmatprep.subr.bf16.mxu0 %v718_v0 }
  0x56   :  { %582 = vmatpush3.bf16.msra.mxu1 %v630_v17 }
  0x57   :  { %564 = vmatmul.mubr.bf16.vlgmr.msra.gmra.mrb[0].mxu0 %v622_v9 }
  0x58   :  { %603 = vmatprep.mubr.msk.bf16.mxu0 %vm719_vm0, %v718_v0  ;;  %588 = vmatpush3.bf16.msra.mxu0 %v631_v62 }
  0x59   :  { %589 = vmatprep.subr.bf16.mxu0 %v718_v0 }
  0x5c   :  { %590 = vmatpush3.bf16.msra.mxu0 %v632_v63 }
  0x5d   :  { %591 = vmatprep.subr.bf16.mxu0 %v718_v0 }
  0x60   :  { %592 = vmatpush3.bf16.msra.mxu0 %v633_v1 }
  0x61   :  { %593 = vmatprep.subr.bf16.mxu0 %v718_v0 }
  0x64   :  { %594 = vmatpush3.bf16.msra.mxu0 %v634_v2 }
  0x65   :  { %595 = vmatprep.subr.bf16.mxu0 %v718_v0 }
  0x68   :  { %596 = vmatpush3.bf16.msra.mxu0 %v635_v3 }
  0x69   :  { %597 = vmatprep.subr.bf16.mxu0 %v718_v0 }
  0x6c   :  { %598 = vmatpush3.bf16.msra.mxu0 %v636_v4 }
  0x6d   :  { %599 = vmatprep.subr.bf16.mxu0 %v718_v0 }
  0x70   :  { %600 = vmatpush3.bf16.msra.mxu0 %v637_v5 }
  0x71   :  { %601 = vmatprep.subr.bf16.mxu0 %v718_v0 }
  0x74   :  { %602 = vmatpush3.bf16.msra.mxu0 %v638_v6 }
 0x12a   :  { %v175_v18 = vpop.f32.mrb[0].mxu0 }
 0x12b   :  { %v565_v19 = vpop.f32.mrb[1].mxu0  ;;  %v190_v21 = vmul.f32 %v175_v18, %v175_v18 }
 0x12c   :  { %v178_v20 = vpop.f32.mrb[2].mxu0 }
 0x12d   :  { %v182_v22 = vadd.f32 %v178_v20, %v175_v18  ;;  %v191_v23 = vmul.f32 %v178_v20, %v178_v20  ;;  %v566_v24 = vpop.f32.mrb[3].mxu0 }
 0x12f   :  { %v183_v25 = vrot.slane %v182_v22, 4  ;;  %v192_v26 = vadd.f32 %v191_v23, %v190_v21 }
 0x131   :  { %v184_v27 = vadd.f32 %v183_v25, %v182_v22  ;;  %v193_v28 = vrot.slane %v192_v26, 4 }
 0x133   :  { %v185_v29 = vrot.slane %v184_v27, 2  ;;  %v194_v30 = vadd.f32 %v193_v28, %v192_v26 }
 0x135   :  { %v186_v31 = vadd.f32 %v185_v29, %v184_v27  ;;  %v195_v32 = vrot.slane %v194_v30, 2 }
 0x137   :  { %v187_v33 = vrot.slane %v186_v31, 1  ;;  %v196_v34 = vadd.f32 %v195_v32, %v194_v30 }
 0x139   :  { %v188_v35 = vadd.f32 %v187_v33, %v186_v31  ;;  %v197_v36 = vrot.slane %v196_v34, 1  ;;  %v241_v31 = vld [vmem:[%s876_s4] sm:$0x3] }
 0x13b   :  { %v189_v37 = vmul.f32 0.0625, %v188_v35  ;;  %v198_v38 = vadd.f32 %v197_v36, %v196_v34 }
 0x13d   :  { %v199_v39 = vmul.f32 0.0625, %v198_v38  ;;  %v200_v40 = vmul.f32 %v189_v37, %v189_v37 }
 0x13f   :  { %v201_v41 = vsub.f32 %v199_v39, %v200_v40 }
 0x141   :  { %v202_v42 = vadd.f32 1e-05, %v201_v41 }
 0x143   :  { %639 = vrsqrt.f32 %v202_v42 }
 0x14d   :  { %v640_v47 = vpop.eup %639 }
 0x14e   :  { %v204_v48 = vmul.f32 %v640_v47, %v86_v45 }
 0x150   :  { %v205_v49 = vmul.f32 %v204_v48, %v189_v37  ;;  %v213_v50 = vrot.slane %v204_v48, %v212_v46  ;;  %v511_v48 = vld [vmem:[%s878_s6] ss:$0 sm:$0xff] }
 0x152   :  { %v207_v51 = vrot.slane %v205_v49, 7  ;;  %v214_v52 = vmul.f32 %v213_v50, %v175_v18  ;;  %v215_v53 = vmul.f32 %v213_v50, %v178_v20 }
 0x154   :  { %v209_v55 = vsub.f32 %v86_v45, %v207_v51 }
 0x156   :  { %v219_v56 = vrot.slane %v209_v55, %v218_v54 }
 0x158   :  { %v221_v57 = vadd.f32 %v219_v56, %v215_v53  ;;  %v220_v58 = vadd.f32 %v219_v56, %v214_v52 }
 0x15a   :  { %v222_v59 = vmax.f32 %v220_v58, 0.0  ;;  %v223_v60 = vmax.f32 %v221_v57, 0.0 }
 0x15c   :  { %v224_v61 = vpack.c.bf16 %v223_v60, %v222_v59 }
 0x15e   :  { %584 = vmatmul.mubr.bf16.vlgmr.msra.gmra.mrb[0].mxu1 %v224_v61 }
 0x231   :  { %v324_v7 = vpop.f32.mrb[0].mxu1 }
 0x232   :  { %v585_v8 = vpop.f32.mrb[1].mxu1  ;;  %v339_v10 = vmul.f32 %v324_v7, %v324_v7 }
 0x233   :  { %v327_v9 = vpop.f32.mrb[2].mxu1 }
 0x234   :  { %v331_v11 = vadd.f32 %v327_v9, %v324_v7  ;;  %v340_v12 = vmul.f32 %v327_v9, %v327_v9  ;;  %v586_v13 = vpop.f32.mrb[3].mxu1 }
 0x236   :  { %v332_v14 = vrot.slane %v331_v11, 4  ;;  %v341_v15 = vadd.f32 %v340_v12, %v339_v10 }
 0x238   :  { %v333_v16 = vadd.f32 %v332_v14, %v331_v11  ;;  %v342_v17 = vrot.slane %v341_v15, 4 }
 0x23a   :  { %v334_v18 = vrot.slane %v333_v16, 2  ;;  %v343_v19 = vadd.f32 %v342_v17, %v341_v15 }
 0x23c   :  { %v335_v20 = vadd.f32 %v334_v18, %v333_v16  ;;  %v344_v21 = vrot.slane %v343_v19, 2 }
 0x23e   :  { %v336_v22 = vrot.slane %v335_v20, 1  ;;  %v345_v23 = vadd.f32 %v344_v21, %v343_v19 }
 0x240   :  { %v337_v0 = vadd.f32 %v336_v22, %v335_v20  ;;  %v346_v24 = vrot.slane %v345_v23, 1 }
 0x242   :  { %v338_v25 = vmul.f32 0.0625, %v337_v0  ;;  %v347_v26 = vadd.f32 %v346_v24, %v345_v23 }
 0x244   :  { %v348_v27 = vmul.f32 0.0625, %v347_v26  ;;  %v349_v28 = vmul.f32 %v338_v25, %v338_v25 }
 0x246   :  { %v350_v29 = vsub.f32 %v348_v27, %v349_v28 }
 0x248   :  { %v351_v30 = vadd.f32 1e-05, %v350_v29 }
 0x24a   :  { %641 = vrsqrt.f32 %v351_v30 }
 0x254   :  { %v642_v32 = vpop.eup %641 }
 0x255   :  { %v353_v33 = vmul.f32 %v642_v32, %v241_v31 }
 0x257   :  { %v354_v34 = vmul.f32 %v353_v33, %v338_v25  ;;  %v362_v35 = vrot.slane %v353_v33, %v212_v46 }
 0x259   :  { %v356_v36 = vrot.slane %v354_v34, 7  ;;  %v363_v37 = vmul.f32 %v362_v35, %v324_v7  ;;  %v364_v38 = vmul.f32 %v362_v35, %v327_v9 }
 0x25b   :  { %v358_v39 = vsub.f32 %v241_v31, %v356_v36 }
 0x25d   :  { %v368_v40 = vrot.slane %v358_v39, %v218_v54 }
 0x25f   :  { %v369_v41 = vadd.f32 %v368_v40, %v363_v37  ;;  %v370_v42 = vadd.f32 %v368_v40, %v364_v38 }
 0x261   :  { %v372_v43 = vmax.f32 %v370_v42, 0.0  ;;  %v371_v45 = vmax.f32 %v369_v41, 0.0 }
 0x263   :  { %v373_v47 = vpack.c.bf16 %v372_v43, %v371_v45 }
 0x265   :  { %604 = vmatmul.mubr.bf16.vlgmr.msra.gmra.mrb[4].mxu0 %v373_v47 }
 0x338   :  { %v479_v49 = vpop.f32.mrb[4].mxu0 }
 0x339   :  { %v480_v50 = vadd.f32 %v511_v48, %v479_v49  ;;  %v605_v46 = vpop.f32.mrb[5].mxu0 }
 0x33a   :  { %v482_v51 = vpop.f32.mrb[6].mxu0 }
 0x33b   :  { %486 = vst [vmem:[%s879_s7] sm:$0xff] %v480_v50  ;;  %v483_v44 = vadd.f32 %v511_v48, %v482_v51  ;;  %v606_v52 = vpop.f32.mrb[7].mxu0 }
 0x33d   :  { %487 = vst [vmem:[%s879_s7 + $0x8] sm:$0xff] %v483_v44 }
 0x33e   :  { %492 = vsyncpa [#allocation3], 1 }
 0x33f   :  { %493 = vsyncpa [#allocation5], 1 }

</bundles_post_ra>
